<compile_context>
chip_gen: v6e
topology: v6e:2x2x1
jax: 0.10.0
libtpu: 0.0.40
codegen_flags: <defaults>
</compile_context>

<pallas_src>
import functools

import jax
import jax.numpy as jnp
from jax.experimental import pallas as pl
from jax.experimental.pallas import tpu as pltpu


# --------------------- pass 1: conv + BN partial statistics ------------------

def conv_stats_kernel(patches_ref, wck_ref, y_ref, stats_ref, *, t_in, n_out):
    """One column tile: conv as lane-dense (C,Kp)@(Kp,TP) matmuls per time step
    plus per-channel sum / sum-of-squares partials for training-mode BN."""
    acc_s = jnp.zeros((n_out, 1), jnp.float32)
    acc_q = jnp.zeros((n_out, 1), jnp.float32)
    for t in range(t_in):                                   # static, unrolled
        yt = jnp.dot(wck_ref[...], patches_ref[t],          # bf16 MXU, f32 acc
                     preferred_element_type=jnp.float32)    # (C, TP)
        y_ref[t * n_out:(t + 1) * n_out, :] = yt            # 8-row aligned store
        acc_s = acc_s + jnp.sum(yt, axis=1, keepdims=True)
        acc_q = acc_q + jnp.sum(yt * yt, axis=1, keepdims=True)
    stats_ref[0, :, 0:1] = acc_s                            # per-tile partials
    stats_ref[0, :, 1:2] = acc_q


# --------- pass 2: BN affine + LeakyReLU + temporal Linear + final act -------

def bn_temporal_kernel(ab_ref, wtb_ref, y_ref, out_ref, *, t_in, t_out, n_out,
                       last, neg_slope):
    a = ab_ref[:, 0:1]                                      # (t_in*C, 1) scale
    b = ab_ref[:, 1:2]                                      # (t_in*C, 1) shift
    y = y_ref[...] * a + b                                  # BN (global stats)
    y = jnp.where(y > 0, y, neg_slope * y)                  # LeakyReLU(0.1)
    # temporal Linear as SMEM-scalar VPU FMAs (no kron / extra matmuls)
    for u in range(t_out):
        acc = wtb_ref[u, t_in] + wtb_ref[u, 0] * y[:n_out, :]
        for t in range(1, t_in):
            acc = acc + wtb_ref[u, t] * y[t * n_out:(t + 1) * n_out, :]
        if last:
            acc = jnp.tanh(acc)                             # EUP
        else:
            acc = jnp.where(acc > 0, acc, neg_slope * acc)
        out_ref[u * n_out:(u + 1) * n_out, :] = acc.astype(out_ref.dtype)


# --------------------------------- wrapper -----------------------------------

def _pick_col_tile(P, max_tile):
    """Largest 128*2^k tile <= max_tile that divides P (else the full width)."""
    if P % 128 != 0 or P <= 128:
        return P
    tp = 128
    while tp * 2 <= max_tile and P % (tp * 2) == 0:
        tp *= 2
    return tp


def spatial_temporal_block_pallas(x, params, *, stride=2, padding=(2, 2),
                                  last=True, eps=1e-5, neg_slope=0.1,
                                  max_tile_cols=512):
    conv_w = params["conv_w"].astype(jnp.float32)   # (C_out, C_in, kh, kw)
    gamma = params["bn_gamma"].astype(jnp.float32)  # (C_out,)
    beta = params["bn_beta"].astype(jnp.float32)    # (C_out,)
    wt = params["lin_t_w"].astype(jnp.float32)      # (t_out, t_in)
    bt = params["lin_t_b"].astype(jnp.float32)      # (t_out,)
    # NOTE: conv_b is intentionally not applied in-kernel: training-mode BN
    # subtracts the per-channel batch mean right after the conv, so a
    # per-channel constant cancels exactly. (Re-add it for eval-mode BN.)

    B, t_in, n_in, H, W = x.shape
    n_out, n_in_w, kh_s, kw_s = conv_w.shape
    assert n_in_w == n_in
    t_out = wt.shape[0]
    ph, pw = padding
    Ho = (H + 2 * ph - kh_s) // stride + 1
    Wo = (W + 2 * pw - kw_s) // stride + 1
    P = B * Ho * Wo                               # lane (column) dimension
    K = n_in * kh_s * kw_s
    Kp = ((K + 127) // 128) * 128                 # padded contraction dim

    TP = _pick_col_tile(P, max_tile_cols)
    n_tiles = P // TP

    # ---- im2col, transposed so the big spatial dim is the lane (last) dim ----
    # TODO(synk): stream padded input tiles and form patches on-chip (kh*kw
    # shifted matmuls) to remove the remaining kh*kw x HBM read inflation.
    x_t = jnp.transpose(x, (1, 0, 2, 3, 4))                       # (t,B,C,H,W)
    x_pad = jnp.pad(x_t, ((0, 0), (0, 0), (0, 0), (ph, ph), (pw, pw)))
    slabs = []
    for kh in range(kh_s):
        for kw in range(kw_s):
            slabs.append(x_pad[:, :, :, kh:kh + stride * (Ho - 1) + 1:stride,
                                         kw:kw + stride * (Wo - 1) + 1:stride])
    patches = jnp.stack(slabs, axis=0)                  # (khkw,t,B,Cin,Ho,Wo)
    patches = patches.transpose(1, 3, 0, 2, 4, 5).reshape(t_in, K, P)
    patches = jnp.pad(patches, ((0, 0), (0, Kp - K), (0, 0)))
    patches = patches.astype(jnp.bfloat16)              # halve dominant HBM stream

    wck = jnp.pad(conv_w.reshape(n_out, K), ((0, 0), (0, Kp - K)))
    wck = wck.astype(jnp.bfloat16)                       # (C, Kp), VMEM-resident

    cparams = pltpu.CompilerParams(dimension_semantics=("parallel",),
                                   vmem_limit_bytes=32 * 1024 * 1024)

    # ---------------- pass 1: conv + per-tile BN partial stats ----------------
    k1 = functools.partial(conv_stats_kernel, t_in=t_in, n_out=n_out)
    y, tile_stats = pl.pallas_call(
        k1,
        grid=(n_tiles,),
        in_specs=[pl.BlockSpec((t_in, Kp, TP), lambda i: (0, 0, i)),
                  pl.BlockSpec((n_out, Kp), lambda i: (0, 0))],
        out_specs=[pl.BlockSpec((t_in * n_out, TP), lambda i: (0, i)),
                   pl.BlockSpec((1, n_out, 2), lambda i: (i, 0, 0))],
        out_shape=[jax.ShapeDtypeStruct((t_in * n_out, P), jnp.float32),
                   jax.ShapeDtypeStruct((n_tiles, n_out, 2), jnp.float32)],
        compiler_params=cparams,
    )(patches, wck)

    # --- BN finalize: O(C) math, folds mean/var/gamma/beta into scale+shift ---
    count = float(t_in * P)                              # N*H*W per channel
    totals = jnp.sum(tile_stats, axis=0)                 # (C, 2) global sums
    mean = totals[:, 0] / count
    var = totals[:, 1] / count - mean * mean             # biased, PyTorch train
    a = gamma * jax.lax.rsqrt(var + eps)
    b = beta - mean * a
    ab = jnp.stack([jnp.tile(a, t_in), jnp.tile(b, t_in)], axis=1)  # (t_in*C, 2)
    wtb = jnp.concatenate([wt, bt[:, None]], axis=1)     # (t_out, t_in+1) -> SMEM

    # ------------- pass 2: normalize + act + temporal mix + act --------------
    k2 = functools.partial(bn_temporal_kernel, t_in=t_in, t_out=t_out,
                           n_out=n_out, last=last, neg_slope=neg_slope)
    out2d = pl.pallas_call(
        k2,
        grid=(n_tiles,),
        in_specs=[pl.BlockSpec((t_in * n_out, 2), lambda i: (0, 0)),
                  pl.BlockSpec(memory_space=pltpu.MemorySpace.SMEM),
                  pl.BlockSpec((t_in * n_out, TP), lambda i: (0, i))],
        out_specs=pl.BlockSpec((t_out * n_out, TP), lambda i: (0, i)),
        out_shape=jax.ShapeDtypeStruct((t_out * n_out, P), jnp.float32),
        compiler_params=cparams,
    )(ab, wtb, y)

    # --- un-permute the lane-dense slab into the PyTorch layout ---
    out = out2d.reshape(t_out, n_out, B, Ho, Wo).transpose(2, 0, 1, 3, 4)
    if last:
        out = out.reshape(B, t_out * n_out, Ho, Wo)
    return out


# ------------------------------ pure-JAX reference ---------------------------

def spatial_temporal_block_ref(x, params, *, stride=2, padding=(2, 2), last=True,
                               eps=1e-5, neg_slope=0.1):
    """Mirrors the PyTorch forward (training-mode BatchNorm), f32 throughout."""
    conv_w, conv_b = params["conv_w"], params["conv_b"]
    gamma, beta = params["bn_gamma"], params["bn_beta"]
    wt, bt = params["lin_t_w"], params["lin_t_b"]

    B, t_in, n_in, H, W = x.shape
    n_out = conv_w.shape[0]
    x2 = x.reshape(B * t_in, n_in, H, W)
    y = jax.lax.conv_general_dilated(
        x2, conv_w, window_strides=(stride, stride),
        padding=((padding[0], padding[0]), (padding[1], padding[1])),
        dimension_numbers=("NCHW", "OIHW", "NCHW"),
        precision=jax.lax.Precision.HIGHEST)
    y = y + conv_b[None, :, None, None]
    mean = jnp.mean(y, axis=(0, 2, 3), keepdims=True)
    var = jnp.mean((y - mean) ** 2, axis=(0, 2, 3), keepdims=True)
    y = (y - mean) / jnp.sqrt(var + eps) * gamma[None, :, None, None] \
        + beta[None, :, None, None]
    y = jnp.where(y > 0, y, neg_slope * y)
    Ho, Wo = y.shape[2], y.shape[3]
    y = y.reshape(B, t_in, n_out, Ho, Wo).transpose(0, 2, 3, 4, 1)   # (B,C,H,W,t)
    y = jnp.einsum("bchwt,ut->bchwu", y, wt,
                   precision=jax.lax.Precision.HIGHEST) + bt
    y = y.transpose(0, 4, 1, 2, 3)                                   # (B,t_out,C,H,W)
    if last:
        y = jnp.tanh(y).reshape(B, -1, Ho, Wo)
    else:
        y = jnp.where(y > 0, y, neg_slope * y)
    return y


if __name__ == "__main__":
    B, t_in, t_out = 2, 4, 8
    n_in, n_out = 4, 8
    k_size = 5

    key = jax.random.PRNGKey(0)
    ks = jax.random.split(key, 8)
    bc = 1.0 / (n_in * k_size * k_size) ** 0.5
    btb = 1.0 / t_in ** 0.5
    params = {
        "conv_w": jax.random.uniform(ks[0], (n_out, n_in, k_size, k_size),
                                     jnp.float32, -bc, bc),
        "conv_b": jax.random.uniform(ks[1], (n_out,), jnp.float32, -bc, bc),
        "bn_gamma": jax.random.uniform(ks[2], (n_out,), jnp.float32, 0.5, 1.5),
        "bn_beta": jax.random.uniform(ks[3], (n_out,), jnp.float32, -0.1, 0.1),
        "lin_t_w": jax.random.uniform(ks[4], (t_out, t_in), jnp.float32, -btb, btb),
        "lin_t_b": jax.random.uniform(ks[5], (t_out,), jnp.float32, -btb, btb),
    }

    # Tolerance is bf16-MXU-input / f32-accumulation level (vs. a full-f32 ref).
    TOL = 2e-2

    # (H, W, max_tile_cols): the second config forces a multi-tile grid so the
    # pipelined path and the cross-tile BN-stats combine are both exercised.
    configs = [(16, 16, 512), (32, 32, 128)]
    for (H, W, mtc), xkey in zip(configs, (ks[6], ks[7])):
        x = jax.random.normal(xkey, (B, t_in, n_in, H, W), jnp.float32)
        for last in (True, False):
            out = spatial_temporal_block_pallas(x, params, last=last,
                                                max_tile_cols=mtc)
            out = jax.block_until_ready(out)
            ref = spatial_temporal_block_ref(x, params, last=last)
            assert out.shape == ref.shape, (out.shape, ref.shape)
            err = float(jnp.max(jnp.abs(out - ref)))
            assert err < TOL, f"max abs err {err} (H={H}, last={last})"

    print("KERNEL_OK")
</pallas_src>

<mosaic_0001>
module attributes {stable_mosaic.version = 11 : i64} {
  func.func @conv_stats_kernel(%arg0: i32, %arg1: memref<4x128x128xbf16, #tpu.memory_space<vmem>>, %arg2: memref<8x128xbf16, #tpu.memory_space<vmem>>, %arg3: memref<32x128xf32, #tpu.memory_space<vmem>>, %arg4: memref<1x8x2xf32, #tpu.memory_space<vmem>>) attributes {dimension_semantics = [#tpu.dimension_semantics<parallel>], iteration_bounds = array<i64: 1>, scalar_prefetch = 0 : i64, scratch_operands = 0 : i64, tpu.core_type = #tpu.core_type<tc>, window_params = [{transform_indices = @transform_0, window_bounds = array<i64: 4, 128, 128>}, {pipeline_mode = #tpu.pipeline_mode<synchronous>, transform_indices = @transform_1, window_bounds = array<i64: 8, 128>}, {transform_indices = @transform_2, window_bounds = array<i64: 32, 128>}, {transform_indices = @transform_3, window_bounds = array<i64: 1, 8, 2>}]} {
    %cst = arith.constant 0.000000e+00 : f32
    %0 = vector.broadcast %cst : f32 to vector<8x1xf32>
    %cst_0 = arith.constant 0.000000e+00 : f32
    %1 = vector.broadcast %cst_0 : f32 to vector<8x1xf32>
    %c0 = arith.constant 0 : index
    %c0_1 = arith.constant 0 : index
    %2 = vector.load %arg2[%c0, %c0_1] : memref<8x128xbf16, #tpu.memory_space<vmem>>, vector<8x128xbf16>
    %c0_2 = arith.constant 0 : index
    %c0_3 = arith.constant 0 : index
    %c0_4 = arith.constant 0 : index
    %3 = vector.load %arg1[%c0_2, %c0_3, %c0_4] : memref<4x128x128xbf16, #tpu.memory_space<vmem>>, vector<1x128x128xbf16>
    %4 = vector.shape_cast %3 : vector<1x128x128xbf16> to vector<128x128xbf16>
    %cst_5 = arith.constant dense<0.000000e+00> : vector<8x128xf32>
    %5 = tpu.matmul %2, %4, %cst_5 {dimension_numbers = #tpu.dot_dimension_numbers<[1], [0], [0], [1], [0, 0, 1, 1], [], []>} : vector<8x128xbf16>, vector<128x128xbf16>, vector<8x128xf32> -> vector<8x128xf32>
    %c0_6 = arith.constant 0 : index
    %c0_7 = arith.constant 0 : index
    %6 = vector.load %arg3[%c0_6, %c0_7] : memref<32x128xf32, #tpu.memory_space<vmem>>, vector<8x128xf32>
    tpu.vector_store %arg3[%c0_6, %c0_7], %5 {strides = array<i32>} : memref<32x128xf32, #tpu.memory_space<vmem>>, vector<8x128xf32>,
    %cst_8 = arith.constant dense<0.000000e+00> : vector<8xf32>
    %7 = vector.multi_reduction <add>, %5, %cst_8 [1] : vector<8x128xf32> to vector<8xf32>
    %8 = vector.shape_cast %7 : vector<8xf32> to vector<8x1xf32>
    %9 = arith.addf %0, %8 : vector<8x1xf32>
    %10 = arith.mulf %5, %5 : vector<8x128xf32>
    %cst_9 = arith.constant dense<0.000000e+00> : vector<8xf32>
    %11 = vector.multi_reduction <add>, %10, %cst_9 [1] : vector<8x128xf32> to vector<8xf32>
    %12 = vector.shape_cast %11 : vector<8xf32> to vector<8x1xf32>
    %13 = arith.addf %1, %12 : vector<8x1xf32>
    %c0_10 = arith.constant 0 : index
    %c0_11 = arith.constant 0 : index
    %14 = vector.load %arg2[%c0_10, %c0_11] : memref<8x128xbf16, #tpu.memory_space<vmem>>, vector<8x128xbf16>
    %c1 = arith.constant 1 : index
    %c0_12 = arith.constant 0 : index
    %c0_13 = arith.constant 0 : index
    %15 = vector.load %arg1[%c1, %c0_12, %c0_13] : memref<4x128x128xbf16, #tpu.memory_space<vmem>>, vector<1x128x128xbf16>
    %16 = vector.shape_cast %15 : vector<1x128x128xbf16> to vector<128x128xbf16>
    %cst_14 = arith.constant dense<0.000000e+00> : vector<8x128xf32>
    %17 = tpu.matmul %14, %16, %cst_14 {dimension_numbers = #tpu.dot_dimension_numbers<[1], [0], [0], [1], [0, 0, 1, 1], [], []>} : vector<8x128xbf16>, vector<128x128xbf16>, vector<8x128xf32> -> vector<8x128xf32>
    %c8 = arith.constant 8 : index
    %c0_15 = arith.constant 0 : index
    %18 = vector.load %arg3[%c8, %c0_15] : memref<32x128xf32, #tpu.memory_space<vmem>>, vector<8x128xf32>
    tpu.vector_store %arg3[%c8, %c0_15], %17 {strides = array<i32>} : memref<32x128xf32, #tpu.memory_space<vmem>>, vector<8x128xf32>,
    %cst_16 = arith.constant dense<0.000000e+00> : vector<8xf32>
    %19 = vector.multi_reduction <add>, %17, %cst_16 [1] : vector<8x128xf32> to vector<8xf32>
    %20 = vector.shape_cast %19 : vector<8xf32> to vector<8x1xf32>
    %21 = arith.addf %9, %20 : vector<8x1xf32>
    %22 = arith.mulf %17, %17 : vector<8x128xf32>
    %cst_17 = arith.constant dense<0.000000e+00> : vector<8xf32>
    %23 = vector.multi_reduction <add>, %22, %cst_17 [1] : vector<8x128xf32> to vector<8xf32>
    %24 = vector.shape_cast %23 : vector<8xf32> to vector<8x1xf32>
    %25 = arith.addf %13, %24 : vector<8x1xf32>
    %c0_18 = arith.constant 0 : index
    %c0_19 = arith.constant 0 : index
    %26 = vector.load %arg2[%c0_18, %c0_19] : memref<8x128xbf16, #tpu.memory_space<vmem>>, vector<8x128xbf16>
    %c2 = arith.constant 2 : index
    %c0_20 = arith.constant 0 : index
    %c0_21 = arith.constant 0 : index
    %27 = vector.load %arg1[%c2, %c0_20, %c0_21] : memref<4x128x128xbf16, #tpu.memory_space<vmem>>, vector<1x128x128xbf16>
    %28 = vector.shape_cast %27 : vector<1x128x128xbf16> to vector<128x128xbf16>
    %cst_22 = arith.constant dense<0.000000e+00> : vector<8x128xf32>
    %29 = tpu.matmul %26, %28, %cst_22 {dimension_numbers = #tpu.dot_dimension_numbers<[1], [0], [0], [1], [0, 0, 1, 1], [], []>} : vector<8x128xbf16>, vector<128x128xbf16>, vector<8x128xf32> -> vector<8x128xf32>
    %c16 = arith.constant 16 : index
    %c0_23 = arith.constant 0 : index
    %30 = vector.load %arg3[%c16, %c0_23] : memref<32x128xf32, #tpu.memory_space<vmem>>, vector<8x128xf32>
    tpu.vector_store %arg3[%c16, %c0_23], %29 {strides = array<i32>} : memref<32x128xf32, #tpu.memory_space<vmem>>, vector<8x128xf32>,
    %cst_24 = arith.constant dense<0.000000e+00> : vector<8xf32>
    %31 = vector.multi_reduction <add>, %29, %cst_24 [1] : vector<8x128xf32> to vector<8xf32>
    %32 = vector.shape_cast %31 : vector<8xf32> to vector<8x1xf32>
    %33 = arith.addf %21, %32 : vector<8x1xf32>
    %34 = arith.mulf %29, %29 : vector<8x128xf32>
    %cst_25 = arith.constant dense<0.000000e+00> : vector<8xf32>
    %35 = vector.multi_reduction <add>, %34, %cst_25 [1] : vector<8x128xf32> to vector<8xf32>
    %36 = vector.shape_cast %35 : vector<8xf32> to vector<8x1xf32>
    %37 = arith.addf %25, %36 : vector<8x1xf32>
    %c0_26 = arith.constant 0 : index
    %c0_27 = arith.constant 0 : index
    %38 = vector.load %arg2[%c0_26, %c0_27] : memref<8x128xbf16, #tpu.memory_space<vmem>>, vector<8x128xbf16>
    %c3 = arith.constant 3 : index
    %c0_28 = arith.constant 0 : index
    %c0_29 = arith.constant 0 : index
    %39 = vector.load %arg1[%c3, %c0_28, %c0_29] : memref<4x128x128xbf16, #tpu.memory_space<vmem>>, vector<1x128x128xbf16>
    %40 = vector.shape_cast %39 : vector<1x128x128xbf16> to vector<128x128xbf16>
    %cst_30 = arith.constant dense<0.000000e+00> : vector<8x128xf32>
    %41 = tpu.matmul %38, %40, %cst_30 {dimension_numbers = #tpu.dot_dimension_numbers<[1], [0], [0], [1], [0, 0, 1, 1], [], []>} : vector<8x128xbf16>, vector<128x128xbf16>, vector<8x128xf32> -> vector<8x128xf32>
    %c24 = arith.constant 24 : index
    %c0_31 = arith.constant 0 : index
    %42 = vector.load %arg3[%c24, %c0_31] : memref<32x128xf32, #tpu.memory_space<vmem>>, vector<8x128xf32>
    tpu.vector_store %arg3[%c24, %c0_31], %41 {strides = array<i32>} : memref<32x128xf32, #tpu.memory_space<vmem>>, vector<8x128xf32>,
    %cst_32 = arith.constant dense<0.000000e+00> : vector<8xf32>
    %43 = vector.multi_reduction <add>, %41, %cst_32 [1] : vector<8x128xf32> to vector<8xf32>
    %44 = vector.shape_cast %43 : vector<8xf32> to vector<8x1xf32>
    %45 = arith.addf %33, %44 : vector<8x1xf32>
    %46 = arith.mulf %41, %41 : vector<8x128xf32>
    %cst_33 = arith.constant dense<0.000000e+00> : vector<8xf32>
    %47 = vector.multi_reduction <add>, %46, %cst_33 [1] : vector<8x128xf32> to vector<8xf32>
    %48 = vector.shape_cast %47 : vector<8xf32> to vector<8x1xf32>
    %49 = arith.addf %37, %48 : vector<8x1xf32>
    %c0_34 = arith.constant 0 : index
    %c0_35 = arith.constant 0 : index
    %c0_36 = arith.constant 0 : index
    %50 = vector.load %arg4[%c0_34, %c0_35, %c0_36] : memref<1x8x2xf32, #tpu.memory_space<vmem>>, vector<1x8x1xf32>
    %51 = vector.shape_cast %50 : vector<1x8x1xf32> to vector<8x1xf32>
    %52 = vector.shape_cast %45 : vector<8x1xf32> to vector<1x8x1xf32>
    tpu.vector_store %arg4[%c0_34, %c0_35, %c0_36], %52 {strides = array<i32>} : memref<1x8x2xf32, #tpu.memory_space<vmem>>, vector<1x8x1xf32>,
    %c0_37 = arith.constant 0 : index
    %c0_38 = arith.constant 0 : index
    %c1_39 = arith.constant 1 : index
    %53 = vector.load %arg4[%c0_37, %c0_38, %c1_39] : memref<1x8x2xf32, #tpu.memory_space<vmem>>, vector<1x8x1xf32>
    %54 = vector.shape_cast %53 : vector<1x8x1xf32> to vector<8x1xf32>
    %55 = vector.shape_cast %49 : vector<8x1xf32> to vector<1x8x1xf32>
    tpu.vector_store %arg4[%c0_37, %c0_38, %c1_39], %55 {strides = array<i32>} : memref<1x8x2xf32, #tpu.memory_space<vmem>>, vector<1x8x1xf32>,
    return
  }
  func.func @transform_0(%arg0: i32) -> (i32, i32, i32) {
    %c0_i32 = arith.constant 0 : i32
    %c0_i32_0 = arith.constant 0 : i32
    %c0_i32_1 = arith.constant 0 : i32
    return %c0_i32, %c0_i32_0, %arg0 : i32, i32, i32
  }
  func.func @transform_1(%arg0: i32) -> (i32, i32) {
    %c0_i32 = arith.constant 0 : i32
    %c0_i32_0 = arith.constant 0 : i32
    %c0_i32_1 = arith.constant 0 : i32
    return %c0_i32, %c0_i32_0 : i32, i32
  }
  func.func @transform_2(%arg0: i32) -> (i32, i32) {
    %c0_i32 = arith.constant 0 : i32
    %c0_i32_0 = arith.constant 0 : i32
    return %c0_i32, %arg0 : i32, i32
  }
  func.func @transform_3(%arg0: i32) -> (i32, i32, i32) {
    %c0_i32 = arith.constant 0 : i32
    %c0_i32_0 = arith.constant 0 : i32
    %c0_i32_1 = arith.constant 0 : i32
    return %arg0, %c0_i32, %c0_i32_0 : i32, i32, i32
  }
}

</mosaic_0001>

<bundles_post_ra>
// kernel: tpu_custom_call.1
= control target key start
LH: loop header
LB: loop body
LE: loop exit
PB: predicated region body
PF: predicated region fallthrough
CT: control target
= control target key end

     0   :  { %9 = vsyncpa [#allocation3], 0  ;;  %s861_s0 = inlined_call_operand.hbm [shape: bf16[4,128,128], index: 0, kind: input, shape index: {}]   ;;  %s862_s1 = inlined_call_operand.hbm [shape: bf16[8,128], index: 1, kind: input, shape index: {}]   ;;  %s863_s2 = inlined_call_operand.hbm [shape: f32[32,128], index: 2, kind: output, shape index: {0}]   ;;  %s864_s3 = inlined_call_operand.vmem [shape: f32[1,8,2], index: 3, kind: output, shape index: {1}]  }
   0x1   :  { %10 = vsyncpa [#allocation6], 0 }
   0x2   :  { %11 = vsyncpa [#allocation4], 0  ;;  %s777_s12 = smov [#allocation2]  }
   0x3   :  { %s17_s13 = sshll.u32 %s777_s12, 4  ;;  %s18_s13 = int_to_ptr.vmem [resolvable:$true] %s17_s13 }
   0x4   :  { %s719_s14 = scalar_lea.vmem %s18_s13, 4096  ;;  %p724_p1 = scmp.lt.s32.totalorder %s18_s13, %s18_s13 }
   0x5   :  { %p720_p0 = scmp.ne.s32.totalorder %s18_s13, %s719_s14  ;;  %p725_p2 = scmp.lt.s32.totalorder %s719_s14, %s719_s14 }
   0x7   :  { %p726_p3 = por %p725_p2, %p724_p1 }
   0x9   :  { %p727_p4 = pnand %p726_p3, %p720_p0 }
   0xb   :  { %730 = shalt.err (!%p727_p4)
}
   0xc   :  { %s778_s15 = smov 64   ;;  %s779_s16 = smov 4  }
   0xd   :  { %23 = dma.hbm_to_vmem [thread:$0]  %s861_s0, 4096, %s18_s13, [#allocation3], %s778_s15, %s778_s15, %s779_s16  }
   0xe   :  { %s780_s19 = smov [#allocation5]  }
   0xf   :  { %s30_s20 = sshll.u32 %s780_s19, 4  ;;  %s31_s20 = int_to_ptr.vmem [resolvable:$true] %s30_s20 }
  0x10   :  { %s739_s21 = scalar_lea.vmem %s31_s20, 64  ;;  %p744_p6 = scmp.lt.s32.totalorder %s31_s20, %s31_s20 }
  0x11   :  { %p740_p5 = scmp.ne.s32.totalorder %s31_s20, %s739_s21  ;;  %p745_p7 = scmp.lt.s32.totalorder %s739_s21, %s739_s21 }
  0x13   :  { %p746_p8 = por %p745_p7, %p744_p6 }
  0x15   :  { %p747_p9 = pnand %p746_p8, %p740_p5 }
  0x17   :  { %750 = shalt.err (!%p747_p9)
}
  0x18   :  { %33 = dma.hbm_to_vmem [thread:$0]  %s862_s1, 64, %s31_s20, [#allocation6]  }
  0x19   :  { %771 = dma.done.wait [#allocation3], 4096  }
  0x1a   :  { %772 = vsyncadd [#allocation3], 4294963200 }
  0x1b   :  { %773 = dma.done.wait [#allocation6], 64  }
  0x1c   :  { %774 = vsyncadd [#allocation6], 4294967232  ;;  %v781_v0 = vmov 0.0   ;;  %vm782_vm0 = vmmov 0   ;;  %v679_v1 = vld [vmem:[#allocation2 + $0x38] sm:$0xff]   ;;  %v681_v3 = vld [vmem:[#allocation2 + $0x30] sm:$0xff]  }
  0x1d   :  { %590 = vmatprep.subr.bf16.mxu0 %v781_v0  ;;  %610 = vmatprep.subr.bf16.mxu1 %v781_v0  ;;  %v680_v2 = vld [vmem:[#allocation2 + $0x78] sm:$0xff]   ;;  %v682_v4 = vld [vmem:[#allocation2 + $0x70] sm:$0xff]   ;;  %v683_v5 = vld [vmem:[#allocation2 + $0x28] sm:$0xff]   ;;  %s783_s0 = smov [#allocation7]  }
  0x1e   :  { %606 = vmatprep.mubr.msk.bf16.mxu0 %vm782_vm0, %v781_v0  ;;  %626 = vmatprep.mubr.msk.bf16.mxu1 %vm782_vm0, %v781_v0  ;;  %v684_v6 = vld [vmem:[#allocation2 + $0x68] sm:$0xff]   ;;  %v685_v7 = vld [vmem:[#allocation2 + $0x20] sm:$0xff]   ;;  %v687_v9 = vld [vmem:[#allocation2 + $0x18] sm:$0xff]   ;;  %s505_s1 = sshll.u32 %s783_s0, 4  ;;  %s506_s1 = int_to_ptr.vmem [resolvable:$true] %s505_s1 }
  0x1f   :  { %591 = vmatpush3.bf16.msra.mxu0 %v679_v1  ;;  %611 = vmatpush3.bf16.msra.mxu1 %v680_v2  ;;  %v686_v8 = vld [vmem:[#allocation2 + $0x60] sm:$0xff]   ;;  %v688_v10 = vld [vmem:[#allocation2 + $0x58] sm:$0xff]   ;;  %v689_v11 = vld [vmem:[#allocation2 + $0x10] sm:$0xff]   ;;  %s751_s24 = scalar_lea.vmem %s506_s1, 512  ;;  %p756_p11 = scmp.lt.s32.totalorder %s506_s1, %s506_s1 }
  0x20   :  { %592 = vmatprep.subr.bf16.mxu0 %v781_v0  ;;  %612 = vmatprep.subr.bf16.mxu1 %v781_v0  ;;  %v690_v12 = vld [vmem:[#allocation2 + $0x50] sm:$0xff]   ;;  %v691_v13 = vld [vmem:[#allocation2 + $0x8] sm:$0xff]   ;;  %v693_v15 = vld [vmem:[#allocation2] sm:$0xff]   ;;  %p752_p10 = scmp.ne.s32.totalorder %s506_s1, %s751_s24  ;;  %p757_p12 = scmp.lt.s32.totalorder %s751_s24, %s751_s24 }
  0x21   :  { %v692_v14 = vld [vmem:[#allocation2 + $0x48] sm:$0xff]   ;;  %v694_v16 = vld [vmem:[#allocation2 + $0x40] sm:$0xff]   ;;  %v695_v19 = vld [vmem:[#allocation2 + $0xb8] sm:$0xff]  }
  0x22   :  { %v41_v17 = vld [vmem:[#allocation5] sm:$0xf]  ;;  %v696_v20 = vld [vmem:[#allocation2 + $0xf8] sm:$0xff]   ;;  %v697_v21 = vld [vmem:[#allocation2 + $0xb0] sm:$0xff]   ;;  %p758_p13 = por %p757_p12, %p756_p11 }
  0x23   :  { %593 = vmatpush3.bf16.msra.mxu0 %v681_v3  ;;  %613 = vmatpush3.bf16.msra.mxu1 %v682_v4  ;;  %v154_v18 = vld [vmem:[#allocation5] sm:$0xf]  ;;  %v698_v22 = vld [vmem:[#allocation2 + $0xf0] sm:$0xff]   ;;  %v699_v23 = vld [vmem:[#allocation2 + $0xa8] sm:$0xff]  }
  0x24   :  { %594 = vmatprep.subr.bf16.mxu0 %v781_v0  ;;  %614 = vmatprep.subr.bf16.mxu1 %v781_v0  ;;  %v700_v24 = vld [vmem:[#allocation2 + $0xe8] sm:$0xff]   ;;  %v701_v25 = vld [vmem:[#allocation2 + $0xa0] sm:$0xff]   ;;  %v703_v27 = vld [vmem:[#allocation2 + $0x98] sm:$0xff]   ;;  %p759_p0 = pnand %p758_p13, %p752_p10 }
  0x25   :  { %v702_v26 = vld [vmem:[#allocation2 + $0xe0] sm:$0xff]   ;;  %v704_v28 = vld [vmem:[#allocation2 + $0xd8] sm:$0xff]   ;;  %v705_v29 = vld [vmem:[#allocation2 + $0x90] sm:$0xff]  }
  0x26   :  { %v706_v30 = vld [vmem:[#allocation2 + $0xd0] sm:$0xff]   ;;  %v707_v31 = vld [vmem:[#allocation2 + $0x88] sm:$0xff]   ;;  %v709_v33 = vld [vmem:[#allocation2 + $0x80] sm:$0xff]  }
  0x27   :  { %595 = vmatpush3.bf16.msra.mxu0 %v683_v5  ;;  %615 = vmatpush3.bf16.msra.mxu1 %v684_v6  ;;  %v708_v32 = vld [vmem:[#allocation2 + $0xc8] sm:$0xff]   ;;  %v710_v34 = vld [vmem:[#allocation2 + $0xc0] sm:$0xff]  }
  0x28   :  { %596 = vmatprep.subr.bf16.mxu0 %v781_v0  ;;  %616 = vmatprep.subr.bf16.mxu1 %v781_v0  ;;  %v268_v35 = vld [vmem:[#allocation5] sm:$0xf] }
  0x29   :  { %v382_v36 = vld [vmem:[#allocation5] sm:$0xf] }
  0x2b   :  { %597 = vmatpush3.bf16.msra.mxu0 %v685_v7  ;;  %617 = vmatpush3.bf16.msra.mxu1 %v686_v8 }
  0x2c   :  { %598 = vmatprep.subr.bf16.mxu0 %v781_v0  ;;  %618 = vmatprep.subr.bf16.mxu1 %v781_v0 }
  0x2f   :  { %599 = vmatpush3.bf16.msra.mxu0 %v687_v9  ;;  %619 = vmatpush3.bf16.msra.mxu1 %v688_v10 }
  0x30   :  { %600 = vmatprep.subr.bf16.mxu0 %v781_v0  ;;  %620 = vmatprep.subr.bf16.mxu1 %v781_v0 }
  0x33   :  { %601 = vmatpush3.bf16.msra.mxu0 %v689_v11  ;;  %621 = vmatpush3.bf16.msra.mxu1 %v690_v12 }
  0x34   :  { %602 = vmatprep.subr.bf16.mxu0 %v781_v0  ;;  %622 = vmatprep.subr.bf16.mxu1 %v781_v0 }
  0x37   :  { %603 = vmatpush3.bf16.msra.mxu0 %v691_v13  ;;  %623 = vmatpush3.bf16.msra.mxu1 %v692_v14 }
  0x38   :  { %604 = vmatprep.subr.bf16.mxu0 %v781_v0  ;;  %624 = vmatprep.subr.bf16.mxu1 %v781_v0 }
  0x3b   :  { %605 = vmatpush3.bf16.msra.mxu0 %v693_v15  ;;  %625 = vmatpush3.bf16.msra.mxu1 %v694_v16 }
  0x3c   :  { %630 = vmatprep.subr.bf16.mxu0 %v781_v0  ;;  %650 = vmatprep.subr.bf16.mxu1 %v781_v0 }
  0x3e   :  { %607 = vmatmul.mubr.bf16.vlgmr.msra.gmra.mxu0 %v41_v17  ;;  %627 = vmatmul.mubr.bf16.vlgmr.msra.gmra.mxu1 %v154_v18 }
  0x3f   :  { %631 = vmatpush3.bf16.msra.mxu0 %v695_v19  ;;  %651 = vmatpush3.bf16.msra.mxu1 %v696_v20 }
  0x40   :  { %632 = vmatprep.subr.bf16.mxu0 %v781_v0  ;;  %652 = vmatprep.subr.bf16.mxu1 %v781_v0 }
  0x41   :  { %646 = vmatprep.mubr.msk.bf16.mxu0 %vm782_vm0, %v781_v0  ;;  %666 = vmatprep.mubr.msk.bf16.mxu1 %vm782_vm0, %v781_v0 }
  0x43   :  { %633 = vmatpush3.bf16.msra.mxu0 %v697_v21  ;;  %653 = vmatpush3.bf16.msra.mxu1 %v698_v22 }
  0x44   :  { %634 = vmatprep.subr.bf16.mxu0 %v781_v0  ;;  %654 = vmatprep.subr.bf16.mxu1 %v781_v0 }
  0x47   :  { %635 = vmatpush3.bf16.msra.mxu0 %v699_v23  ;;  %655 = vmatpush3.bf16.msra.mxu1 %v700_v24 }
  0x48   :  { %636 = vmatprep.subr.bf16.mxu0 %v781_v0  ;;  %656 = vmatprep.subr.bf16.mxu1 %v781_v0 }
  0x4b   :  { %637 = vmatpush3.bf16.msra.mxu0 %v701_v25  ;;  %657 = vmatpush3.bf16.msra.mxu1 %v702_v26 }
  0x4c   :  { %638 = vmatprep.subr.bf16.mxu0 %v781_v0  ;;  %658 = vmatprep.subr.bf16.mxu1 %v781_v0 }
  0x4f   :  { %639 = vmatpush3.bf16.msra.mxu0 %v703_v27  ;;  %659 = vmatpush3.bf16.msra.mxu1 %v704_v28 }
  0x50   :  { %640 = vmatprep.subr.bf16.mxu0 %v781_v0  ;;  %660 = vmatprep.subr.bf16.mxu1 %v781_v0 }
  0x53   :  { %641 = vmatpush3.bf16.msra.mxu0 %v705_v29  ;;  %661 = vmatpush3.bf16.msra.mxu1 %v706_v30 }
  0x54   :  { %642 = vmatprep.subr.bf16.mxu0 %v781_v0  ;;  %662 = vmatprep.subr.bf16.mxu1 %v781_v0 }
  0x57   :  { %643 = vmatpush3.bf16.msra.mxu0 %v707_v31  ;;  %663 = vmatpush3.bf16.msra.mxu1 %v708_v32 }
  0x58   :  { %644 = vmatprep.subr.bf16.mxu0 %v781_v0  ;;  %664 = vmatprep.subr.bf16.mxu1 %v781_v0 }
  0x5b   :  { %645 = vmatpush3.bf16.msra.mxu0 %v709_v33  ;;  %665 = vmatpush3.bf16.msra.mxu1 %v710_v34 }
  0x5e   :  { %647 = vmatmul.mubr.bf16.vlgmr.msra.gmra.mxu0 %v268_v35  ;;  %667 = vmatmul.mubr.bf16.vlgmr.msra.gmra.mxu1 %v382_v36 }
  0xfe   :  { %v140_v37 = vpop.f32.mrf.mxu0  ;;  %v254_v38 = vpop.f32.mrf.mxu1 }
  0xff   :  { %146 = vst [vmem:[#allocation7] sm:$0xff] %v140_v37  ;;  %147 = vadd.xlane.f32.xlu0 %v140_v37  ;;  %v150_v39 = vmul.f32 %v140_v37, %v140_v37  ;;  %260 = vst [vmem:[#allocation7 + $0x8] sm:$0xff] %v254_v38  ;;  %v264_v42 = vmul.f32 %v254_v38, %v254_v38 }
 0x100   :  { %v608_v40 = vpop.f32.mrf.mxu0  ;;  %v628_v41 = vpop.f32.mrf.mxu1 }
 0x101   :  { %151 = vadd.xlane.f32.xlu1 %v150_v39 }
 0x102   :  { %v143_v43 = vpop.f32.mrf.mxu0  ;;  %v257_v44 = vpop.f32.mrf.mxu1 }
 0x103   :  { %261 = vadd.xlane.f32.xlu0 %v254_v38 }
 0x104   :  { %v609_v45 = vpop.f32.mrf.mxu0  ;;  %v629_v46 = vpop.f32.mrf.mxu1 }
 0x105   :  { %265 = vadd.xlane.f32.xlu1 %v264_v42 }
 0x11e   :  { %v368_v47 = vpop.f32.mrf.mxu0  ;;  %v482_v48 = vpop.f32.mrf.mxu1 }
 0x11f   :  { %374 = vst [vmem:[#allocation7 + $0x10] sm:$0xff] %v368_v47  ;;  %375 = vadd.xlane.f32.xlu0 %v368_v47  ;;  %v378_v49 = vmul.f32 %v368_v47, %v368_v47  ;;  %488 = vst [vmem:[#allocation7 + $0x18] sm:$0xff] %v482_v48  ;;  %v492_v52 = vmul.f32 %v482_v48, %v482_v48 }
 0x120   :  { %v648_v50 = vpop.f32.mrf.mxu0  ;;  %v668_v51 = vpop.f32.mrf.mxu1 }
 0x121   :  { %379 = vadd.xlane.f32.xlu1 %v378_v49 }
 0x122   :  { %v371_v53 = vpop.f32.mrf.mxu0  ;;  %v485_v54 = vpop.f32.mrf.mxu1 }
 0x123   :  { %489 = vadd.xlane.f32.xlu0 %v482_v48 }
 0x124   :  { %v649_v55 = vpop.f32.mrf.mxu0  ;;  %v669_v56 = vpop.f32.mrf.mxu1 }
 0x125   :  { %493 = vadd.xlane.f32.xlu1 %v492_v52 }
 0x126   :  { %762 = shalt.err (!%p759_p0)
}
 0x127   :  { %s784_s25 = smov 128   ;;  %s785_s26 = smov 8   ;;  %vm496_vm1 = vcmask 7168   ;;  %vm498_vm2 = vcmask 15368  }
 0x128   :  { %511 = dma.vmem_to_hbm [thread:$0]  %s506_s1, 512, %s863_s2, [#allocation4], %s784_s25, %s784_s25, %s785_s26  }
 0x188   :  { %v148_v57 = vpop.xlane.xlu0 %147 }
 0x18a   :  { %v152_v58 = vpop.xlane.xlu1 %151 }
 0x18c   :  { %v262_v59 = vpop.xlane.xlu0 %261 }
 0x18d   :  { %v263_v62 = vadd.f32 %v262_v59, %v148_v57 }
 0x18e   :  { %v266_v60 = vpop.xlane.xlu1 %265 }
 0x18f   :  { %v267_v0 = vadd.f32 %v266_v60, %v152_v58 }
 0x1a8   :  { %v376_v61 = vpop.xlane.xlu0 %375 }
 0x1a9   :  { %v377_v1 = vadd.f32 %v376_v61, %v263_v62 }
 0x1aa   :  { %v380_v63 = vpop.xlane.xlu1 %379 }
 0x1ab   :  { %v381_v3 = vadd.f32 %v380_v63, %v267_v0 }
 0x1ac   :  { %v490_v2 = vpop.xlane.xlu0 %489 }
 0x1ad   :  { %v491_v4 = vadd.f32 %v490_v2, %v377_v1 }
 0x1ae   :  { %v494_v5 = vpop.xlane.xlu1 %493 }
 0x1af   :  { %497 = vst.msk [vmem:[%s864_s3] sm:$0xff] %vm496_vm1, %v491_v4  ;;  %v495_v6 = vadd.f32 %v494_v5, %v381_v3 }
 0x1b1   :  { %499 = vst.msk [vmem:[%s864_s3] sm:$0xff] %vm498_vm2, %v495_v6 }
 0x1b2   :  { %775 = dma.done.wait [#allocation4], 512  }
 0x1b3   :  { %776 = vsyncadd [#allocation4], 4294966784 }
 0x1b4   :  { %519 = vsyncpa [#allocation3], 1 }
 0x1b5   :  { %520 = vsyncpa [#allocation6], 1 }
 0x1b6   :  { %521 = vsyncpa [#allocation4], 1 }

</bundles_post_ra>
